<compile_context>
chip_gen: v5e
topology: v5e:2x2
jax: 0.10.0
libtpu: 0.0.40
codegen_flags: <defaults>
</compile_context>

<pallas_src>
import jax
import jax.numpy as jnp
from jax.experimental import pallas as pl
from jax.experimental.pallas import tpu as pltpu

# ---------------- model dimensions (small, deterministic) ----------------
B = 2            # batch
C_IN = 3         # pixel channels
H = W = 16       # spatial
NUM_EXPERTS = 4
TOP_K = 2
NUM_QUERIES = 8
HIDDEN = 32
NUM_CLASSES = 8  # includes "no-object"
BOX_DIM = 4
LHS_DIM = 768    # last_hidden_state dim imposed by the wrapper
PACK = 128       # lane-dense per-expert packed head width: [classes | boxes | 0]
EPACK = NUM_EXPERTS * PACK

assert NUM_CLASSES + BOX_DIM <= PACK


# ---------------- single fused kernel (no grid, everything VMEM-resident) ----
def fused_moe_det_kernel(pix_ref, wc_ref, bg_ref, bq_ref, out_ref):
    pix = pix_ref[...]                                        # (B, C_IN, H*W)

    # --- backbone global-avg-pool fused with gate + heads rank-1 FMA chain ---
    # combined[b, :] = pooled[b, :] @ [wg_pad | wp @ w_heads]
    # C_IN = 3 rank-1 VPU FMAs; no MXU (a K=3 contraction would only pay the
    # systolic push/pop fixed cost).
    p0 = jnp.mean(pix[:, 0, :], axis=-1, keepdims=True)       # (B, 1)
    combined = p0 * wc_ref[0:1, :]                            # (B, PACK + E*PACK)
    for c in range(1, C_IN):
        pc = jnp.mean(pix[:, c, :], axis=-1, keepdims=True)
        combined = combined + pc * wc_ref[c:c + 1, :]

    # --- gating network: lanes [0, NUM_EXPERTS) of the first 128-lane block ---
    glogits = combined[:, :NUM_EXPERTS] + bg_ref[...]         # (B, E)
    glogits = glogits - jnp.max(glogits, axis=-1, keepdims=True)
    ex = jnp.exp(glogits)
    probs = ex / jnp.sum(ex, axis=-1, keepdims=True)          # (B, E)

    # --- in-kernel top-k (k=2) selection + renormalization ---
    idx = jax.lax.broadcasted_iota(jnp.int32, probs.shape, 1)
    m1 = jnp.max(probs, axis=-1, keepdims=True)
    i1 = jnp.min(jnp.where(probs == m1, idx, NUM_EXPERTS), axis=-1, keepdims=True)
    mask1 = idx == i1                                         # first max (min-index tie-break)
    rest = jnp.where(mask1, -jnp.inf, probs)
    m2 = jnp.max(rest, axis=-1, keepdims=True)
    i2 = jnp.min(jnp.where(rest == m2, idx, NUM_EXPERTS), axis=-1, keepdims=True)
    mask2 = idx == i2                                         # second max
    w_full = jnp.where(mask1 | mask2, probs, 0.0)
    w_full = w_full / jnp.sum(w_full, axis=-1, keepdims=True)  # (B, E), renormalized

    # --- per-expert heads: precomputed base (per batch) + per-query bias ------
    base = combined[:, PACK:]                                 # (B, E*PACK)
    heads = (base.reshape(B, 1, EPACK)
             + bq_ref[...].reshape(1, NUM_QUERIES, EPACK))    # (B, Q, E*PACK)

    # single sigmoid pass over every expert's box lanes (one EUP push)
    lane = jax.lax.broadcasted_iota(jnp.int32, (1, NUM_QUERIES, EPACK), 2)
    lane_in_pack = jnp.bitwise_and(lane, PACK - 1)
    box_mask = (lane_in_pack >= NUM_CLASSES) & (lane_in_pack < NUM_CLASSES + BOX_DIM)
    heads = jnp.where(box_mask, jax.nn.sigmoid(heads), heads)
    # TODO(synk): sigmoid is applied per-expert *before* the gate-weighted
    # combine; if the unseen IntegratedMoE applies it after combining, the
    # pred_boxes values differ (both stay in [0, 1]).

    # --- gate-weighted combine: static 4-way unroll, acc seeded with expert 0 --
    acc = w_full[:, 0:1].reshape(B, 1, 1) * heads[:, :, 0:PACK]
    for e in range(1, NUM_EXPERTS):
        acc = acc + (w_full[:, e:e + 1].reshape(B, 1, 1)
                     * heads[:, :, e * PACK:(e + 1) * PACK])

    out_ref[...] = acc                                        # (B, Q, 128) lane-dense


# ---------------- wrapper (MoEObjectDetectionModel.forward) ------------------
def moe_object_detection_forward(pixel_values, params):
    # present pixels as (B, C_IN, H*W) so the pool reduces a dense 256-lane axis
    pix2 = pixel_values.reshape(B, C_IN, H * W)

    vmem = pl.BlockSpec(memory_space=pltpu.MemorySpace.VMEM)
    packed = pl.pallas_call(
        fused_moe_det_kernel,
        out_shape=jax.ShapeDtypeStruct((B, NUM_QUERIES, PACK), jnp.float32),
        in_specs=[vmem, vmem, vmem, vmem],
        out_specs=vmem,
        cost_estimate=pl.CostEstimate(
            flops=60_000,
            transcendentals=B * NUM_QUERIES * EPACK + B * NUM_EXPERTS,
            bytes_accessed=(pix2.size + params["w_comb"].size + params["bg"].size
                            + params["bq"].size + B * NUM_QUERIES * PACK) * 4,
        ),
    )(pix2, params["w_comb"], params["bg"], params["bq"])

    logits = packed[..., :NUM_CLASSES]                        # (B, Q, NUM_CLASSES)
    pred_boxes = packed[..., NUM_CLASSES:NUM_CLASSES + BOX_DIM]  # (B, Q, 4)

    # wrapper post-processing
    if pred_boxes.shape[-1] != 4:
        # TODO(synk): the PyTorch "EMERGENCY FIX" print is a host side-effect;
        # only the truncation is reproduced.
        pred_boxes = pred_boxes[..., :4]

    return {
        "logits": logits,
        "pred_boxes": pred_boxes,
        "loss": jnp.array(0.0, dtype=jnp.float32),
        "last_hidden_state": jnp.zeros((B, NUM_QUERIES, LHS_DIM), dtype=logits.dtype),
    }


# ---------------- parameter init (all static algebra folded here) ------------
def init_params(key):
    ks = jax.random.split(key, 5)
    s = 0.1
    wg = s * jax.random.normal(ks[0], (C_IN, NUM_EXPERTS), jnp.float32)
    bg = jnp.zeros((1, NUM_EXPERTS), jnp.float32)
    wp = s * jax.random.normal(ks[1], (C_IN, HIDDEN), jnp.float32)
    qemb = s * jax.random.normal(ks[2], (NUM_QUERIES, HIDDEN), jnp.float32)

    # logical per-expert class / box heads
    wc = s * jax.random.normal(ks[3], (NUM_EXPERTS, HIDDEN, NUM_CLASSES), jnp.float32)
    bc = jnp.zeros((NUM_EXPERTS, NUM_CLASSES), jnp.float32)
    wb = s * jax.random.normal(ks[4], (NUM_EXPERTS, HIDDEN, BOX_DIM), jnp.float32)
    bb = jnp.zeros((NUM_EXPERTS, BOX_DIM), jnp.float32)

    # pack per-expert [Wc | Wb | 0-pad] into 128-lane blocks (once, at init)
    w_heads = jnp.zeros((HIDDEN, EPACK), jnp.float32)
    b_heads = jnp.zeros((1, EPACK), jnp.float32)
    for e in range(NUM_EXPERTS):
        off = e * PACK
        w_heads = w_heads.at[:, off:off + NUM_CLASSES].set(wc[e])
        w_heads = w_heads.at[:, off + NUM_CLASSES:off + NUM_CLASSES + BOX_DIM].set(wb[e])
        b_heads = b_heads.at[0, off:off + NUM_CLASSES].set(bc[e])
        b_heads = b_heads.at[0, off + NUM_CLASSES:off + NUM_CLASSES + BOX_DIM].set(bb[e])

    # fold the static chain:  heads = pooled @ (wp @ w_heads) + (qemb @ w_heads + b_heads)
    wph = wp @ w_heads                                        # (C_IN, E*PACK)
    bq = qemb @ w_heads + b_heads                             # (Q,    E*PACK)

    # fuse gate weights into the same rank-1 FMA chain (padded to a full 128-lane
    # block so the expert slab stays vreg-aligned): w_comb = [wg | 0 | wp @ w_heads]
    wg_pad = jnp.zeros((C_IN, PACK), jnp.float32).at[:, :NUM_EXPERTS].set(wg)
    w_comb = jnp.concatenate([wg_pad, wph], axis=1)           # (C_IN, PACK + E*PACK)

    return {"w_comb": w_comb, "bg": bg, "bq": bq}


if __name__ == "__main__":
    key = jax.random.PRNGKey(0)
    k_pix, k_par = jax.random.split(key)
    pixel_values = jax.random.normal(k_pix, (B, C_IN, H, W), jnp.float32)  # NCHW like PyTorch
    params = init_params(k_par)

    outputs = jax.jit(moe_object_detection_forward)(pixel_values, params)
    outputs = jax.block_until_ready(outputs)

    assert outputs["logits"].shape == (B, NUM_QUERIES, NUM_CLASSES)
    assert outputs["pred_boxes"].shape == (B, NUM_QUERIES, 4)
    assert outputs["last_hidden_state"].shape == (B, NUM_QUERIES, LHS_DIM)
    assert float(outputs["loss"]) == 0.0
    assert bool(jnp.all(jnp.isfinite(outputs["logits"])))
    assert bool(jnp.all((outputs["pred_boxes"] >= 0.0) & (outputs["pred_boxes"] <= 1.0)))
    print("KERNEL_OK")
</pallas_src>

<mosaic_0001>
module attributes {stable_mosaic.version = 11 : i64} {
  func.func @fused_moe_det_kernel(%arg0: memref<2x3x256xf32, #tpu.memory_space<vmem>>, %arg1: memref<3x640xf32, #tpu.memory_space<vmem>>, %arg2: memref<1x4xf32, #tpu.memory_space<vmem>>, %arg3: memref<8x512xf32, #tpu.memory_space<vmem>>, %arg4: memref<2x8x128xf32, #tpu.memory_space<vmem>>) attributes {dimension_semantics = [], scalar_prefetch = 0 : i64, scratch_operands = 0 : i64, tpu.core_type = #tpu.core_type<tc>} {
    %c0 = arith.constant 0 : index
    %c0_0 = arith.constant 0 : index
    %c0_1 = arith.constant 0 : index
    %0 = vector.load %arg0[%c0, %c0_0, %c0_1] : memref<2x3x256xf32, #tpu.memory_space<vmem>>, vector<2x3x256xf32>
    %1 = vector.extract_strided_slice %0 {offsets = [0, 0, 0], sizes = [2, 1, 256], strides = [1, 1, 1]} : vector<2x3x256xf32> to vector<2x1x256xf32>
    %2 = vector.shape_cast %1 : vector<2x1x256xf32> to vector<2x256xf32>
    %cst = arith.constant dense<0.000000e+00> : vector<2xf32>
    %3 = vector.multi_reduction <add>, %2, %cst [1] : vector<2x256xf32> to vector<2xf32>
    %4 = vector.shape_cast %3 : vector<2xf32> to vector<2x1xf32>
    %cst_2 = arith.constant 2.560000e+02 : f32
    %5 = vector.broadcast %cst_2 : f32 to vector<2x1xf32>
    %6 = arith.divf %4, %5 : vector<2x1xf32>
    %c0_3 = arith.constant 0 : index
    %c0_4 = arith.constant 0 : index
    %7 = vector.load %arg1[%c0_3, %c0_4] : memref<3x640xf32, #tpu.memory_space<vmem>>, vector<1x640xf32>
    %8 = vector.broadcast %6 : vector<2x1xf32> to vector<2x640xf32>
    %9 = vector.broadcast %7 : vector<1x640xf32> to vector<2x640xf32>
    %10 = arith.mulf %8, %9 : vector<2x640xf32>
    %11 = vector.extract_strided_slice %0 {offsets = [0, 1, 0], sizes = [2, 1, 256], strides = [1, 1, 1]} : vector<2x3x256xf32> to vector<2x1x256xf32>
    %12 = vector.shape_cast %11 : vector<2x1x256xf32> to vector<2x256xf32>
    %cst_5 = arith.constant dense<0.000000e+00> : vector<2xf32>
    %13 = vector.multi_reduction <add>, %12, %cst_5 [1] : vector<2x256xf32> to vector<2xf32>
    %14 = vector.shape_cast %13 : vector<2xf32> to vector<2x1xf32>
    %cst_6 = arith.constant 2.560000e+02 : f32
    %15 = vector.broadcast %cst_6 : f32 to vector<2x1xf32>
    %16 = arith.divf %14, %15 : vector<2x1xf32>
    %c1 = arith.constant 1 : index
    %c0_7 = arith.constant 0 : index
    %17 = vector.load %arg1[%c1, %c0_7] : memref<3x640xf32, #tpu.memory_space<vmem>>, vector<1x640xf32>
    %18 = vector.broadcast %16 : vector<2x1xf32> to vector<2x640xf32>
    %19 = vector.broadcast %17 : vector<1x640xf32> to vector<2x640xf32>
    %20 = arith.mulf %18, %19 : vector<2x640xf32>
    %21 = arith.addf %10, %20 : vector<2x640xf32>
    %22 = vector.extract_strided_slice %0 {offsets = [0, 2, 0], sizes = [2, 1, 256], strides = [1, 1, 1]} : vector<2x3x256xf32> to vector<2x1x256xf32>
    %23 = vector.shape_cast %22 : vector<2x1x256xf32> to vector<2x256xf32>
    %cst_8 = arith.constant dense<0.000000e+00> : vector<2xf32>
    %24 = vector.multi_reduction <add>, %23, %cst_8 [1] : vector<2x256xf32> to vector<2xf32>
    %25 = vector.shape_cast %24 : vector<2xf32> to vector<2x1xf32>
    %cst_9 = arith.constant 2.560000e+02 : f32
    %26 = vector.broadcast %cst_9 : f32 to vector<2x1xf32>
    %27 = arith.divf %25, %26 : vector<2x1xf32>
    %c2 = arith.constant 2 : index
    %c0_10 = arith.constant 0 : index
    %28 = vector.load %arg1[%c2, %c0_10] : memref<3x640xf32, #tpu.memory_space<vmem>>, vector<1x640xf32>
    %29 = vector.broadcast %27 : vector<2x1xf32> to vector<2x640xf32>
    %30 = vector.broadcast %28 : vector<1x640xf32> to vector<2x640xf32>
    %31 = arith.mulf %29, %30 : vector<2x640xf32>
    %32 = arith.addf %21, %31 : vector<2x640xf32>
    %33 = vector.extract_strided_slice %32 {offsets = [0, 0], sizes = [2, 4], strides = [1, 1]} : vector<2x640xf32> to vector<2x4xf32>
    %c0_11 = arith.constant 0 : index
    %c0_12 = arith.constant 0 : index
    %34 = vector.load %arg2[%c0_11, %c0_12] : memref<1x4xf32, #tpu.memory_space<vmem>>, vector<1x4xf32>
    %35 = vector.broadcast %34 : vector<1x4xf32> to vector<2x4xf32>
    %36 = arith.addf %33, %35 : vector<2x4xf32>
    %cst_13 = arith.constant dense<0xFF800000> : vector<2xf32>
    %37 = vector.multi_reduction <maximumf>, %36, %cst_13 [1] : vector<2x4xf32> to vector<2xf32>
    %38 = vector.shape_cast %37 : vector<2xf32> to vector<2x1xf32>
    %39 = vector.broadcast %38 : vector<2x1xf32> to vector<2x4xf32>
    %40 = arith.subf %36, %39 : vector<2x4xf32>
    %41 = math.exp %40 : vector<2x4xf32>
    %cst_14 = arith.constant dense<0.000000e+00> : vector<2xf32>
    %42 = vector.multi_reduction <add>, %41, %cst_14 [1] : vector<2x4xf32> to vector<2xf32>
    %43 = vector.shape_cast %42 : vector<2xf32> to vector<2x1xf32>
    %44 = vector.broadcast %43 : vector<2x1xf32> to vector<2x4xf32>
    %45 = arith.divf %41, %44 : vector<2x4xf32>
    %46 = tpu.iota {dimensions = array<i32: 1>} : vector<2x4xi32>
    %cst_15 = arith.constant dense<0xFF800000> : vector<2xf32>
    %47 = vector.multi_reduction <maximumf>, %45, %cst_15 [1] : vector<2x4xf32> to vector<2xf32>
    %48 = vector.shape_cast %47 : vector<2xf32> to vector<2x1xf32>
    %49 = vector.broadcast %48 : vector<2x1xf32> to vector<2x4xf32>
    %50 = arith.cmpf oeq, %45, %49 : vector<2x4xf32>
    %c4_i32 = arith.constant 4 : i32
    %51 = vector.broadcast %c4_i32 : i32 to vector<2x4xi32>
    %52 = arith.select %50, %46, %51 : vector<2x4xi1>, vector<2x4xi32>
    %cst_16 = arith.constant dense<2147483647> : vector<2xi32>
    %53 = vector.multi_reduction <minsi>, %52, %cst_16 [1] : vector<2x4xi32> to vector<2xi32>
    %54 = vector.shape_cast %53 : vector<2xi32> to vector<2x1xi32>
    %55 = vector.broadcast %54 : vector<2x1xi32> to vector<2x4xi32>
    %56 = arith.cmpi eq, %46, %55 : vector<2x4xi32>
    %cst_17 = arith.constant 0xFF800000 : f32
    %57 = vector.broadcast %cst_17 : f32 to vector<2x4xf32>
    %58 = arith.select %56, %57, %45 : vector<2x4xi1>, vector<2x4xf32>
    %cst_18 = arith.constant dense<0xFF800000> : vector<2xf32>
    %59 = vector.multi_reduction <maximumf>, %58, %cst_18 [1] : vector<2x4xf32> to vector<2xf32>
    %60 = vector.shape_cast %59 : vector<2xf32> to vector<2x1xf32>
    %61 = vector.broadcast %60 : vector<2x1xf32> to vector<2x4xf32>
    %62 = arith.cmpf oeq, %58, %61 : vector<2x4xf32>
    %c4_i32_19 = arith.constant 4 : i32
    %63 = vector.broadcast %c4_i32_19 : i32 to vector<2x4xi32>
    %64 = arith.select %62, %46, %63 : vector<2x4xi1>, vector<2x4xi32>
    %cst_20 = arith.constant dense<2147483647> : vector<2xi32>
    %65 = vector.multi_reduction <minsi>, %64, %cst_20 [1] : vector<2x4xi32> to vector<2xi32>
    %66 = vector.shape_cast %65 : vector<2xi32> to vector<2x1xi32>
    %67 = vector.broadcast %66 : vector<2x1xi32> to vector<2x4xi32>
    %68 = arith.cmpi eq, %46, %67 : vector<2x4xi32>
    %69 = arith.ori %56, %68 : vector<2x4xi1>
    %cst_21 = arith.constant 0.000000e+00 : f32
    %70 = vector.broadcast %cst_21 : f32 to vector<2x4xf32>
    %71 = arith.select %69, %45, %70 : vector<2x4xi1>, vector<2x4xf32>
    %cst_22 = arith.constant dense<0.000000e+00> : vector<2xf32>
    %72 = vector.multi_reduction <add>, %71, %cst_22 [1] : vector<2x4xf32> to vector<2xf32>
    %73 = vector.shape_cast %72 : vector<2xf32> to vector<2x1xf32>
    %74 = vector.broadcast %73 : vector<2x1xf32> to vector<2x4xf32>
    %75 = arith.divf %71, %74 : vector<2x4xf32>
    %76 = vector.extract_strided_slice %32 {offsets = [0, 128], sizes = [2, 512], strides = [1, 1]} : vector<2x640xf32> to vector<2x512xf32>
    %77 = vector.shape_cast %76 : vector<2x512xf32> to vector<2x1x512xf32>
    %c0_23 = arith.constant 0 : index
    %c0_24 = arith.constant 0 : index
    %78 = vector.load %arg3[%c0_23, %c0_24] : memref<8x512xf32, #tpu.memory_space<vmem>>, vector<8x512xf32>
    %79 = vector.shape_cast %78 : vector<8x512xf32> to vector<1x8x512xf32>
    %80 = vector.broadcast %77 : vector<2x1x512xf32> to vector<2x8x512xf32>
    %81 = vector.broadcast %79 : vector<1x8x512xf32> to vector<2x8x512xf32>
    %82 = arith.addf %80, %81 : vector<2x8x512xf32>
    %83 = tpu.iota {dimensions = array<i32: 2>} : vector<1x8x512xi32>
    %c127_i32 = arith.constant 127 : i32
    %84 = vector.broadcast %c127_i32 : i32 to vector<1x8x512xi32>
    %85 = arith.andi %83, %84 : vector<1x8x512xi32>
    %c8_i32 = arith.constant 8 : i32
    %86 = vector.broadcast %c8_i32 : i32 to vector<1x8x512xi32>
    %87 = arith.cmpi sge, %85, %86 : vector<1x8x512xi32>
    %c12_i32 = arith.constant 12 : i32
    %88 = vector.broadcast %c12_i32 : i32 to vector<1x8x512xi32>
    %89 = arith.cmpi slt, %85, %88 : vector<1x8x512xi32>
    %90 = arith.andi %87, %89 : vector<1x8x512xi1>
    %91 = arith.negf %82 : vector<2x8x512xf32>
    %92 = math.exp %91 : vector<2x8x512xf32>
    %cst_25 = arith.constant 1.000000e+00 : f32
    %93 = vector.broadcast %cst_25 : f32 to vector<2x8x512xf32>
    %94 = arith.addf %93, %92 : vector<2x8x512xf32>
    %95 = arith.divf %93, %94 : vector<2x8x512xf32>
    %96 = vector.shape_cast %90 : vector<1x8x512xi1> to vector<1x8x512xi1>
    %97 = vector.broadcast %96 : vector<1x8x512xi1> to vector<2x8x512xi1>
    %98 = arith.select %97, %95, %82 : vector<2x8x512xi1>, vector<2x8x512xf32>
    %99 = vector.extract_strided_slice %75 {offsets = [0, 0], sizes = [2, 1], strides = [1, 1]} : vector<2x4xf32> to vector<2x1xf32>
    %100 = vector.shape_cast %99 : vector<2x1xf32> to vector<2x1x1xf32>
    %101 = vector.extract_strided_slice %98 {offsets = [0, 0, 0], sizes = [2, 8, 128], strides = [1, 1, 1]} : vector<2x8x512xf32> to vector<2x8x128xf32>
    %102 = vector.broadcast %100 : vector<2x1x1xf32> to vector<2x8x128xf32>
    %103 = arith.mulf %102, %101 : vector<2x8x128xf32>
    %104 = vector.extract_strided_slice %75 {offsets = [0, 1], sizes = [2, 1], strides = [1, 1]} : vector<2x4xf32> to vector<2x1xf32>
    %105 = vector.shape_cast %104 : vector<2x1xf32> to vector<2x1x1xf32>
    %106 = vector.extract_strided_slice %98 {offsets = [0, 0, 128], sizes = [2, 8, 128], strides = [1, 1, 1]} : vector<2x8x512xf32> to vector<2x8x128xf32>
    %107 = vector.broadcast %105 : vector<2x1x1xf32> to vector<2x8x128xf32>
    %108 = arith.mulf %107, %106 : vector<2x8x128xf32>
    %109 = arith.addf %103, %108 : vector<2x8x128xf32>
    %110 = vector.extract_strided_slice %75 {offsets = [0, 2], sizes = [2, 1], strides = [1, 1]} : vector<2x4xf32> to vector<2x1xf32>
    %111 = vector.shape_cast %110 : vector<2x1xf32> to vector<2x1x1xf32>
    %112 = vector.extract_strided_slice %98 {offsets = [0, 0, 256], sizes = [2, 8, 128], strides = [1, 1, 1]} : vector<2x8x512xf32> to vector<2x8x128xf32>
    %113 = vector.broadcast %111 : vector<2x1x1xf32> to vector<2x8x128xf32>
    %114 = arith.mulf %113, %112 : vector<2x8x128xf32>
    %115 = arith.addf %109, %114 : vector<2x8x128xf32>
    %116 = vector.extract_strided_slice %75 {offsets = [0, 3], sizes = [2, 1], strides = [1, 1]} : vector<2x4xf32> to vector<2x1xf32>
    %117 = vector.shape_cast %116 : vector<2x1xf32> to vector<2x1x1xf32>
    %118 = vector.extract_strided_slice %98 {offsets = [0, 0, 384], sizes = [2, 8, 128], strides = [1, 1, 1]} : vector<2x8x512xf32> to vector<2x8x128xf32>
    %119 = vector.broadcast %117 : vector<2x1x1xf32> to vector<2x8x128xf32>
    %120 = arith.mulf %119, %118 : vector<2x8x128xf32>
    %121 = arith.addf %115, %120 : vector<2x8x128xf32>
    %c0_26 = arith.constant 0 : index
    %c0_27 = arith.constant 0 : index
    %c0_28 = arith.constant 0 : index
    %122 = vector.load %arg4[%c0_26, %c0_27, %c0_28] : memref<2x8x128xf32, #tpu.memory_space<vmem>>, vector<2x8x128xf32>
    tpu.vector_store %arg4[%c0_26, %c0_27, %c0_28], %121 {strides = array<i32>} : memref<2x8x128xf32, #tpu.memory_space<vmem>>, vector<2x8x128xf32>,
    return
  }
}

</mosaic_0001>

<bundles_post_ra>
// kernel: moe_object_detection_forward.1
= control target key start
LH: loop header
LB: loop body
LE: loop exit
PB: predicated region body
PF: predicated region fallthrough
CT: control target
= control target key end

     0   :  { %vm65_vm0 = vcmask 1042434   ;;  %vm70_vm1 = vcmask 1042433   ;;  %vm119_vm2 = vcmask 1043459   ;;  %vm124_vm3 = vcmask 1043458   ;;  %s1067_s0 = inlined_call_operand.vmem [shape: f32[2,3,256], index: 0, kind: input, shape index: {}]   ;;  %s1068_s2 = inlined_call_operand.vmem [shape: f32[1,4], index: 2, kind: input, shape index: {}]   ;;  %s1069_s1 = inlined_call_operand.vmem [shape: f32[3,640], index: 1, kind: input, shape index: {}]   ;;  %s1070_s3 = inlined_call_operand.vmem [shape: f32[8,512], index: 3, kind: input, shape index: {}]   ;;  %s1071_s4 = inlined_call_operand.vmem [shape: f32[2,8,128], index: 4, kind: output, shape index: {}]  }
   0x1   :  { %v17_v0 = vld [vmem:[%s1067_s0] sm:$0x77]  ;;  %v18_v1 = vld [vmem:[%s1067_s0 + $0x8] sm:$0x77]  ;;  %vm25_vm4 = vcmask 1041409   ;;  %vm30_vm5 = vcmask 1041408  }
   0x2   :  { %v61_v2 = vperm.slane %v17_v0, 1  ;;  %v62_v3 = vperm.slane %v17_v0, 5  ;;  %v63_v4 = vperm.slane %v18_v1, 1  ;;  %v64_v5 = vperm.slane %v18_v1, 5 }
   0x3   :  { %v115_v6 = vperm.slane %v17_v0, 2  ;;  %v116_v7 = vperm.slane %v17_v0, 6  ;;  %v117_v8 = vperm.slane %v18_v1, 2  ;;  %v118_v9 = vperm.slane %v18_v1, 6 }
   0x4   :  { %v66_v10 = vsel %vm65_vm0, %v63_v4, %v61_v2  ;;  %v67_v11 = vsel %vm65_vm0, %v64_v5, %v62_v3  ;;  %v21_v12 = vperm.slane %v17_v0, 0  ;;  %v22_v13 = vperm.slane %v17_v0, 4  ;;  %v550_v35 = vld [vmem:[%s1069_s1 + $0x1] ss:$4 sm:$0x1f] }
   0x5   :  { %v71_v14 = vsel %vm70_vm1, %v66_v10, 0.0  ;;  %v72_v15 = vsel %vm70_vm1, %v67_v11, 0.0  ;;  %v120_v16 = vsel %vm119_vm2, %v117_v8, %v115_v6  ;;  %v121_v17 = vsel %vm119_vm2, %v118_v9, %v116_v7  ;;  %v551_v36 = vld [vmem:[%s1069_s1 + $0x2] ss:$4 sm:$0x1f] }
   0x6   :  { %v73_v18 = vadd.f32 %v72_v15, %v71_v14  ;;  %v125_v19 = vsel %vm124_vm3, %v120_v16, 0.0  ;;  %v126_v20 = vsel %vm124_vm3, %v121_v17, 0.0  ;;  %v23_v21 = vperm.slane %v18_v1, 0  ;;  %v44_v57 = vld [vmem:[%s1069_s1] ss:$4 sm:$0x1f] }
   0x7   :  { %v127_v22 = vadd.f32 %v126_v20, %v125_v19  ;;  %v24_v23 = vperm.slane %v18_v1, 4  ;;  %v613_v29 = vmov 256.0   ;;  %v81_v38 = vperm.slane %v550_v35, 1 }
   0x8   :  { %74 = vadd.xlane.f32.xlu0 %v73_v18  ;;  %v26_v24 = vsel %vm25_vm4, %v23_v21, %v21_v12  ;;  %573 = vrcp.f32 %v613_v29  ;;  %v135_v40 = vperm.slane %v551_v36, 1  ;;  %v136_v41 = vperm.slane %v551_v36, 2 }
   0x9   :  { %128 = vadd.xlane.f32.xlu1 %v127_v22  ;;  %v27_v25 = vsel %vm25_vm4, %v24_v23, %v22_v13  ;;  %v31_v26 = vsel %vm30_vm5, %v26_v24, 0.0  ;;  %v137_v42 = vperm.slane %v551_v36, 3  ;;  %v138_v43 = vperm.slane %v551_v36, 4 }
   0xa   :  { %v32_v27 = vsel %vm30_vm5, %v27_v25, 0.0  ;;  %v82_v44 = vperm.slane %v550_v35, 2  ;;  %v83_v45 = vperm.slane %v550_v35, 3  ;;  %v84_v46 = vperm.slane %v550_v35, 4 }
   0xb   :  { %v33_v28 = vadd.f32 %v32_v27, %v31_v26  ;;  %v80_v51 = vperm.slane %v550_v35, 0  ;;  %v134_v52 = vperm.slane %v551_v36, 0  ;;  %v47_v61 = vperm.slane %v44_v57, 1  ;;  %v572_v26 = vld [vmem:[%s1068_s2] ss:$0 sm:$0xff] }
   0xc   :  { %v48_v62 = vperm.slane %v44_v57, 2  ;;  %v49_v63 = vperm.slane %v44_v57, 3  ;;  %v50_v0 = vperm.slane %v44_v57, 4  ;;  %v46_v3 = vperm.slane %v44_v57, 0 }
   0xd   :  { %vm271_vm7 = vcmask 1040384   ;;  %vm174_vm8 = vcmask 25600  }
   0xe   :  { %v574_v30 = vpop.eup %573 }
   0xf   :  { %v37_v31 = vmul.f32 256.0, %v574_v30  ;;  %vm41_vm6 = vweird.f32 %v574_v30 }
  0x10   :  { %34 = vadd.xlane.f32.xlu0 %v33_v28 }
  0x11   :  { %v38_v32 = vsub.f32 1.0, %v37_v31 }
  0x13   :  { %v39_v33 = vmul.f32 %v574_v30, %v38_v32 }
  0x15   :  { %v40_v34 = vadd.f32 %v574_v30, %v39_v33 }
  0x17   :  { %v42_v37 = vsel %vm41_vm6, %v574_v30, %v40_v34 }
  0x7b   :  { %v75_v39 = vpop.xlane.xlu0 %74 }
  0x7c   :  { %v76_v47 = vmul.f32 %v75_v39, %v42_v37  ;;  %v129_v48 = vpop.xlane.xlu1 %128 }
  0x7d   :  { %v130_v49 = vmul.f32 %v129_v48, %v42_v37 }
  0x7e   :  { %v91_v50 = vmul.f32 %v81_v38, %v76_v47  ;;  %v92_v58 = vmul.f32 %v82_v44, %v76_v47  ;;  %v93_v59 = vmul.f32 %v83_v45, %v76_v47  ;;  %v94_v60 = vmul.f32 %v84_v46, %v76_v47 }
  0x7f   :  { %v145_v53 = vmul.f32 %v135_v40, %v130_v49  ;;  %v146_v54 = vmul.f32 %v136_v41, %v130_v49  ;;  %v147_v55 = vmul.f32 %v137_v42, %v130_v49  ;;  %v148_v56 = vmul.f32 %v138_v43, %v130_v49 }
  0x80   :  { %v101_v1 = vrot.slane %v91_v50, 1  ;;  %v90_v4 = vmul.f32 %v80_v51, %v76_v47  ;;  %v144_v5 = vmul.f32 %v134_v52, %v130_v49  ;;  %v102_v6 = vrot.slane %v92_v58, 1 }
  0x81   :  { %v103_v7 = vrot.slane %v93_v59, 1  ;;  %v104_v8 = vrot.slane %v94_v60, 1  ;;  %v155_v10 = vrot.slane %v145_v53, 2  ;;  %v156_v11 = vrot.slane %v146_v54, 2 }
  0x82   :  { %v157_v12 = vrot.slane %v147_v55, 2  ;;  %v158_v13 = vrot.slane %v148_v56, 2  ;;  %v100_v19 = vrot.slane %v90_v4, 1  ;;  %v154_v20 = vrot.slane %v144_v5, 2 }
  0x83   :  { %v35_v2 = vpop.xlane.xlu0 %34 }
  0x84   :  { %v43_v9 = vmul.f32 %v42_v37, %v35_v2 }
  0x86   :  { %v57_v14 = vmul.f32 %v47_v61, %v43_v9  ;;  %v58_v15 = vmul.f32 %v48_v62, %v43_v9  ;;  %v59_v16 = vmul.f32 %v49_v63, %v43_v9  ;;  %v60_v17 = vmul.f32 %v50_v0, %v43_v9 }
  0x87   :  { %v56_v18 = vmul.f32 %v46_v3, %v43_v9  ;;  %v199_v61 = vlaneseq }
  0x88   :  { %v111_v21 = vadd.f32 %v101_v1, %v57_v14  ;;  %v112_v22 = vadd.f32 %v102_v6, %v58_v15  ;;  %v113_v23 = vadd.f32 %v103_v7, %v59_v16  ;;  %v114_v24 = vadd.f32 %v104_v8, %v60_v17 }
  0x89   :  { %v110_v25 = vadd.f32 %v100_v19, %v56_v18  ;;  %v685_v62 = vand.u32 127, %v199_v61 }
  0x8a   :  { %v165_v27 = vadd.f32 %v155_v10, %v111_v21  ;;  %v166_v28 = vadd.f32 %v156_v11, %v112_v22  ;;  %v167_v29 = vadd.f32 %v157_v12, %v113_v23  ;;  %v168_v30 = vadd.f32 %v158_v13, %v114_v24 }
  0x8b   :  { %v164_v31 = vadd.f32 %v154_v20, %v110_v25 }
  0x8c   :  { %v268_v32 = vrot.slane %v166_v28, 7  ;;  %v269_v33 = vrot.slane %v167_v29, 6  ;;  %v270_v34 = vrot.slane %v168_v30, 5 }
  0x8d   :  { %v173_v35 = vadd.f32 %v572_v26, %v164_v31  ;;  %v614_v31 = vmov 2  }
  0x8e   :  { %v272_v36 = vsel %vm271_vm7, %v165_v27, %v268_v32  ;;  %v273_v37 = vsel %vm65_vm0, %v269_v33, %v270_v34  ;;  %v275_v38 = vsel %vm25_vm4, %v165_v27, %v268_v32  ;;  %v276_v39 = vsel %vm119_vm2, %v269_v33, %v270_v34  ;;  %567 = vset.pattern.permute.xlu1 %v614_v31 }
  0x8f   :  { %v175_v40 = vsel %vm174_vm8, %v173_v35, -inf  ;;  %v678_v41 = vsel %vm30_vm5, %v272_v36, %v273_v37  ;;  %v681_v42 = vsel %vm70_vm1, %v275_v38, %v276_v39  ;;  %v615_v32 = vmov 1  }
  0x90   :  { %176 = vmax.xlane.f32.xlu1 %v175_v40  ;;  %566 = vset.pattern.permute.xlu2 %v615_v32  ;;  %v616_v33 = vmov 0  }
  0x91   :  { %565 = vset.pattern.permute.xlu0 %v616_v33 }
 0x103   :  { %v177_v43 = vpop.xlane.xlu1 %176 }
 0x104   :  { %v178_v44 = vsub.f32 %v173_v35, %v177_v43 }
 0x106   :  { %v179_v45 = vmul.f32 1.442695, %v178_v44 }
 0x108   :  { %575 = vpow2.f32 %v179_v45 }
 0x10e   :  { %v576_v46 = vpop.eup %575 }
 0x10f   :  { %v181_v47 = vsel %vm174_vm8, %v576_v46, 0.0 }
 0x110   :  { %182 = vadd.xlane.f32.xlu2 %v181_v47 }
 0x183   :  { %v183_v48 = vpop.xlane.xlu2 %182 }
 0x184   :  { %577 = vrcp.f32 %v183_v48  ;;  %v195_v52 = vand.u32 2147483648, %v183_v48  ;;  %v193_v54 = vand.u32 2147483647, %v183_v48  ;;  %vm189_vm10 = vweird.f32 %v183_v48 }
 0x186   :  { %v196_v56 = vor.u32 1.1754944e-38, %v195_v52  ;;  %vm194_vm12 = vcmp.eq.f32.partialorder %v193_v54, 8.507059e+37  ;;  %v278_v52 = vrot.slane %v681_v42, 1  ;;  %v280_v54 = vld [vmem:[%s1070_s3 + $0x8] sm:$0xff]  ;;  %v285_v42 = vperm.slane %v678_v41, 2 }
 0x18a   :  { %v578_v49 = vpop.eup %577 }
 0x18b   :  { %v185_v50 = vmul.f32 %v578_v49, %v183_v48  ;;  %vm190_vm9 = vweird.f32 %v578_v49 }
 0x18c   :  { %vm191_vm11 = vmor %vm189_vm10, %vm190_vm9 }
 0x18d   :  { %v186_v51 = vsub.f32 1.0, %v185_v50 }
 0x18f   :  { %v187_v53 = vmul.f32 %v578_v49, %v186_v51  ;;  %v617_v51 = vmov 3  }
 0x191   :  { %v188_v55 = vadd.f32 %v578_v49, %v187_v53  ;;  %v284_v53 = vperm.slane %v678_v41, 1 }
 0x193   :  { %v192_v57 = vsel %vm191_vm11, %v578_v49, %v188_v55  ;;  %v288_v55 = vperm.slane %v278_v52, 1 }
 0x194   :  { %v197_v58 = vsel %vm194_vm12, %v196_v56, %v192_v57  ;;  %v287_v56 = vperm.slane %v278_v52, 0  ;;  %v283_v57 = vperm.slane %v678_v41, 0 }
 0x195   :  { %v198_v59 = vmul.f32 %v576_v46, %v197_v58  ;;  %v705_v58 = vadd.f32 %v284_v53, %v280_v54  ;;  %v710_v61 = vadd.f32 %v288_v55, %v280_v54 }
 0x197   :  { %v201_v60 = vsel %vm174_vm8, %v198_v59, -inf }
 0x198   :  { %202 = vmax.xlane.f32.xlu2 %v201_v60  ;;  %v279_v60 = vld [vmem:[%s1070_s3] sm:$0xff] }
 0x20b   :  { %v203_v63 = vpop.xlane.xlu2 %202 }
 0x20c   :  { %vm204_vm13 = vcmp.eq.f32.partialorder %v198_v59, %v203_v63  ;;  %v281_v63 = vld [vmem:[%s1070_s3 + $0x10] sm:$0xff] }
 0x20d   :  { %v205_v0 = vsel %vm204_vm13, %v685_v62, 4 }
 0x20e   :  { %v206_v1 = vsel %vm174_vm8, %v205_v0, 2147483647  ;;  %v290_v0 = vperm.slane %v278_v52, 3 }
 0x20f   :  { %v208_v2 = vshra.s32 %v206_v1, 16  ;;  %v207_v4 = vand.u32 65535, %v206_v1  ;;  %v716_v1 = vadd.f32 %v287_v56, %v279_v60 }
 0x211   :  { %v210_v3 = vcvt.s32.f32 %v208_v2  ;;  %v209_v6 = vcvt.s32.f32 %v207_v4  ;;  %v718_v2 = vadd.f32 %v283_v57, %v279_v60 }
 0x213   :  { %211 = vmin.xlane.f32.xlu0 %v210_v3 }
 0x286   :  { %v212_v5 = vpop.xlane.xlu0 %211 }
 0x287   :  { %vm213_vm14 = vcmp.eq.f32.partialorder %v210_v3, %v212_v5  ;;  %v218_v8 = vcvt.f32.s32 %v212_v5  ;;  %v553_v3 = vmul.f32 -1.442695, %v705_v58  ;;  %v557_v5 = vmul.f32 -1.442695, %v710_v61 }
 0x288   :  { %v214_v7 = vsel %vm213_vm14, %v209_v6, inf  ;;  %v724_v6 = vadd.f32 %v285_v42, %v281_v63 }
 0x289   :  { %215 = vmin.xlane.f32.xlu1 %v214_v7  ;;  %v219_v10 = vshll.u32 %v218_v8, 16  ;;  %v282_v7 = vld [vmem:[%s1070_s3 + $0x18] sm:$0xff] }
 0x28a   :  { %v729_v8 = vadd.f32 %v290_v0, %v282_v7 }
 0x2fc   :  { %v216_v9 = vpop.xlane.xlu1 %215 }
 0x2fd   :  { %v217_v11 = vcvt.f32.s32 %v216_v9  ;;  %v556_v9 = vmul.f32 -1.442695, %v716_v1 }
 0x2ff   :  { %v220_v12 = vadd.s32 %v219_v10, %v217_v11  ;;  %v552_v10 = vmul.f32 -1.442695, %v718_v2  ;;  %v286_v11 = vperm.slane %v678_v41, 3 }
 0x301   :  { %vm221_vm15 = vcmp.eq.s32.totalorder %v685_v62, %v220_v12 }
 0x302   :  { %v222_v13 = vsel %vm221_vm15, -inf, %v198_v59 }
 0x303   :  { %v223_v14 = vsel %vm174_vm8, %v222_v13, -inf }
 0x304   :  { %224 = vmax.xlane.f32.xlu2 %v223_v14  ;;  %v559_v14 = vmul.f32 -1.442695, %v729_v8 }
 0x377   :  { %v225_v15 = vpop.xlane.xlu2 %224 }
 0x378   :  { %vm226_vm0 = vcmp.eq.f32.partialorder %v222_v13, %v225_v15  ;;  %v554_v13 = vmul.f32 -1.442695, %v724_v6  ;;  %v737_v15 = vadd.f32 %v286_v11, %v282_v7 }
 0x379   :  { %v227_v16 = vsel %vm226_vm0, %v685_v62, 4 }
 0x37a   :  { %v228_v17 = vsel %vm174_vm8, %v227_v16, 2147483647 }
 0x37b   :  { %v230_v18 = vshra.s32 %v228_v17, 16  ;;  %v229_v20 = vand.u32 65535, %v228_v17 }
 0x37d   :  { %v232_v19 = vcvt.s32.f32 %v230_v18  ;;  %v231_v22 = vcvt.s32.f32 %v229_v20  ;;  %v555_v18 = vmul.f32 -1.442695, %v737_v15 }
 0x37f   :  { %233 = vmin.xlane.f32.xlu0 %v232_v19 }
 0x3f2   :  { %v234_v21 = vpop.xlane.xlu0 %233 }
 0x3f3   :  { %vm235_vm1 = vcmp.eq.f32.partialorder %v232_v19, %v234_v21  ;;  %v240_v24 = vcvt.f32.s32 %v234_v21 }
 0x3f4   :  { %v236_v23 = vsel %vm235_vm1, %v231_v22, inf }
 0x3f5   :  { %237 = vmin.xlane.f32.xlu1 %v236_v23  ;;  %v241_v26 = vshll.u32 %v240_v24, 16 }
 0x468   :  { %v238_v25 = vpop.xlane.xlu1 %237 }
 0x469   :  { %v239_v27 = vcvt.f32.s32 %v238_v25 }
 0x46b   :  { %v242_v28 = vadd.s32 %v241_v26, %v239_v27 }
 0x46d   :  { %vm243_vm2 = vcmp.eq.s32.totalorder %v685_v62, %v242_v28 }
 0x46e   :  { %vm244_vm3 = vmor %vm221_vm15, %vm243_vm2 }
 0x46f   :  { %v245_v29 = vsel %vm244_vm3, %v198_v59, 0.0  ;;  %v289_v59 = vperm.slane %v278_v52, 2 }
 0x470   :  { %v246_v30 = vsel %vm174_vm8, %v245_v29, 0.0 }
 0x471   :  { %247 = vadd.xlane.f32.xlu2 %v246_v30  ;;  %v721_v4 = vadd.f32 %v289_v59, %v281_v63 }
 0x473   :  { %v558_v12 = vmul.f32 -1.442695, %v721_v4 }
 0x4e4   :  { %v248_v34 = vpop.xlane.xlu2 %247 }
 0x4e5   :  { %579 = vrcp.f32 %v248_v34  ;;  %v260_v38 = vand.u32 2147483648, %v248_v34  ;;  %v258_v40 = vand.u32 2147483647, %v248_v34  ;;  %vm254_vm5 = vweird.f32 %v248_v34 }
 0x4e6   :  { %581 = vpow2.f32 %v553_v3 }
 0x4e7   :  { %v261_v44 = vor.u32 1.1754944e-38, %v260_v38  ;;  %vm259_vm7 = vcmp.eq.f32.partialorder %v258_v40, 8.507059e+37  ;;  %583 = vpow2.f32 %v557_v5  ;;  %v773_v38 = vadd.s32 256, %v685_v62 }
 0x4e8   :  { %585 = vpow2.f32 %v556_v9 }
 0x4e9   :  { %587 = vpow2.f32 %v552_v10  ;;  %v312_v52 = vand.u32 127, %v773_v38 }
 0x4ea   :  { %589 = vpow2.f32 %v558_v12 }
 0x4eb   :  { %v580_v35 = vpop.eup %579  ;;  %591 = vpow2.f32 %v554_v13  ;;  %vm863_vm0 = vcmp.lt.s32.totalorder %v312_v52, 12 }
 0x4ec   :  { %v250_v36 = vmul.f32 %v580_v35, %v248_v34  ;;  %vm255_vm4 = vweird.f32 %v580_v35  ;;  %v582_v16 = vpop.eup %581  ;;  %593 = vpow2.f32 %v559_v14 }
 0x4ed   :  { %vm256_vm6 = vmor %vm254_vm5, %vm255_vm4  ;;  %v584_v17 = vpop.eup %583  ;;  %v740_v20 = vadd.f32 1.0, %v582_v16  ;;  %595 = vpow2.f32 %v555_v18 }
 0x4ee   :  { %v251_v37 = vsub.f32 1.0, %v250_v36  ;;  %v586_v41 = vpop.eup %585  ;;  %v742_v22 = vadd.f32 1.0, %v584_v17 }
 0x4ef   :  { %v588_v19 = vpop.eup %587  ;;  %v744_v24 = vadd.f32 1.0, %v586_v41  ;;  %597 = vrcp.f32 %v740_v20  ;;  %vm378_vm10 = vweird.f32 %v740_v20  ;;  %v382_v0 = vand.u32 2147483647, %v740_v20 }
 0x4f0   :  { %v252_v39 = vmul.f32 %v580_v35, %v251_v37  ;;  %v590_v21 = vpop.eup %589  ;;  %v746_v26 = vadd.f32 1.0, %v588_v19  ;;  %599 = vrcp.f32 %v742_v22  ;;  %v444_v60 = vand.u32 2147483648, %v742_v22 }
 0x4f1   :  { %v592_v23 = vpop.eup %591  ;;  %v749_v27 = vadd.f32 1.0, %v590_v21  ;;  %601 = vrcp.f32 %v744_v24  ;;  %v442_v3 = vand.u32 2147483647, %v742_v22  ;;  %vm438_vm11 = vweird.f32 %v742_v22 }
 0x4f2   :  { %v253_v43 = vadd.f32 %v580_v35, %v252_v39  ;;  %v594_v25 = vpop.eup %593  ;;  %v752_v28 = vadd.f32 1.0, %v592_v23  ;;  %603 = vrcp.f32 %v746_v26  ;;  %v445_v41 = vor.u32 1.1754944e-38, %v444_v60 }
 0x4f3   :  { %v596_v30 = vpop.eup %595  ;;  %605 = vrcp.f32 %v749_v27  ;;  %v459_v5 = vand.u32 2147483648, %v749_v27  ;;  %v457_v16 = vand.u32 2147483647, %v749_v27  ;;  %vm830_vm14 = vcmp.eq.f32.partialorder %v442_v3, 8.507059e+37 }
 0x4f4   :  { %v257_v45 = vsel %vm256_vm6, %v580_v35, %v253_v43  ;;  %607 = vrcp.f32 %v752_v28  ;;  %v766_v34 = vadd.f32 1.0, %v596_v30  ;;  %v780_v43 = vadd.s32 384, %v685_v62 }
 0x4f5   :  { %v262_v46 = vsel %vm259_vm7, %v261_v44, %v257_v45  ;;  %v761_v32 = vpop.eup %597  ;;  %v397_v12 = vand.u32 2147483647, %v752_v28  ;;  %v399_v13 = vand.u32 2147483648, %v752_v28  ;;  %vm842_vm2 = vcmp.eq.f32.partialorder %v382_v0, 8.507059e+37 }
 0x4f6   :  { %v263_v47 = vmul.f32 %v262_v46, %v245_v29  ;;  %v754_v29 = vadd.f32 1.0, %v594_v25  ;;  %v374_v45 = vmul.f32 %v761_v32, %v740_v20  ;;  %v313_v57 = vand.u32 127, %v780_v43 }
 0x4f7   :  { %vm379_vm13 = vweird.f32 %v761_v32  ;;  %v834_v25 = vor.u32 1.1754944e-38, %v459_v5  ;;  %vm859_vm7 = vcmp.ge.s32.totalorder %v312_v52, 8  ;;  %vm867_vm1 = vcmp.eq.f32.partialorder %v457_v16, 8.507059e+37 }
 0x4f8   :  { %v496_v48 = vperm.slane %v263_v47, 0  ;;  %v495_v49 = vrot.slane %v263_v47, 1  ;;  %609 = vrcp.f32 %v754_v29  ;;  %v375_v59 = vsub.f32 1.0, %v374_v45  ;;  %vm878_vm15 = vmor %vm378_vm10, %vm379_vm13 }
 0x4f9   :  { %611 = vrcp.f32 %v766_v34  ;;  %v429_v0 = vand.u32 2147483648, %v744_v24  ;;  %vm897_vm13 = vcmp.ge.s32.totalorder %v313_v57, 8  ;;  %vm901_vm4 = vcmp.lt.s32.totalorder %v313_v57, 12 }
 0x4fa   :  { %521 = vperm.xlu1 %567, %v496_v48   ;;  %509 = vperm.xlu2 %566, %v496_v48   ;;  %v497_v50 = vperm.slane %v495_v49, 0  ;;  %v376_v18 = vmul.f32 %v761_v32, %v375_v59  ;;  %vm423_vm3 = vweird.f32 %v744_v24 }
 0x4fb   :  { %499 = vperm.xlu0 %565, %v496_v48  }
 0x502   :  { %568 = vset.pattern.permute.xlu1 %v616_v33  ;;  %513 = vperm.xlu2 %566, %v497_v50   ;;  %v764_v33 = vpop.eup %599 }
 0x503   :  { %571 = vset.pattern.permute.xlu0 %v617_v51  ;;  %503 = vperm.xlu1 %568, %v497_v50   ;;  %v768_v35 = vpop.eup %601  ;;  %v434_v40 = vmul.f32 %v764_v33, %v742_v22  ;;  %vm439_vm5 = vweird.f32 %v764_v33  ;;  %v427_v22 = vand.u32 2147483647, %v744_v24 }
 0x504   :  { %537 = vperm.xlu0 %571, %v497_v50   ;;  %v770_v36 = vpop.eup %603  ;;  %v419_v46 = vmul.f32 %v768_v35, %v744_v24  ;;  %vm424_vm6 = vweird.f32 %v768_v35  ;;  %vm891_vm12 = vmor %vm438_vm11, %vm439_vm5 }
 0x505   :  { %v775_v39 = vpop.eup %605  ;;  %v435_v55 = vsub.f32 1.0, %v434_v40  ;;  %v367_v40 = vand.u32 2147483647, %v746_v26  ;;  %vm915_vm11 = vmor %vm423_vm3, %vm424_vm6  ;;  %vm1098_vm5 = vweird.f32 %v770_v36 }
 0x506   :  { %v782_v44 = vpop.eup %607  ;;  %v449_v53 = vmul.f32 %v775_v39, %v749_v27  ;;  %v420_v63 = vsub.f32 1.0, %v419_v46  ;;  %v369_v46 = vand.u32 2147483648, %v746_v26  ;;  %vm1102_vm3 = vweird.f32 %v775_v39 }
 0x507   :  { %v789_v47 = vpop.eup %609  ;;  %v389_v56 = vmul.f32 %v782_v44, %v752_v28  ;;  %v436_v14 = vmul.f32 %v764_v33, %v435_v55 }
 0x508   :  { %v464_v42 = vmul.f32 %v789_v47, %v754_v29  ;;  %v817_v9 = vpop.eup %611  ;;  %v450_v11 = vsub.f32 1.0, %v449_v53  ;;  %v421_v21 = vmul.f32 %v768_v35, %v420_v63 }
 0x509   :  { %v390_v17 = vsub.f32 1.0, %v389_v56  ;;  %v437_v43 = vadd.f32 %v764_v33, %v436_v14  ;;  %v1094_v14 = vmov 0 }
 0x50a   :  { %569 = vset.pattern.permute.xlu2 %v614_v31  ;;  %v307_v31 = vadd.s32 128, %v685_v62  ;;  %v465_v19 = vsub.f32 1.0, %v464_v42  ;;  %v451_v38 = vmul.f32 %v775_v39, %v450_v11  ;;  %v422_v60 = vadd.f32 %v768_v35, %v421_v21 }
 0x50b   :  { %525 = vperm.xlu2 %569, %v497_v50   ;;  %570 = vset.pattern.permute.xlu1 %v617_v51  ;;  %v384_v50 = vand.u32 2147483648, %v740_v20  ;;  %v391_v45 = vmul.f32 %v782_v44, %v390_v17  ;;  %v1092_v11 = vmov 0  ;;  %v1095_v14 = vsel %vm901_vm4, 4294967295, %v1094_v14 }
 0x50c   :  { %533 = vperm.xlu1 %570, %v496_v48   ;;  %v311_v37 = vand.u32 127, %v307_v31  ;;  %v359_v48 = vmul.f32 %v770_v36, %v746_v26  ;;  %v404_v31 = vmul.f32 %v817_v9, %v766_v34  ;;  %v466_v59 = vmul.f32 %v789_v47, %v465_v19 }
 0x50d   :  { %v819_v10 = vor.u32 1.1754944e-38, %v384_v50  ;;  %v452_v20 = vadd.f32 %v775_v39, %v451_v38  ;;  %v1093_v11 = vsel %vm897_vm13, 4294967295, %v1092_v11  ;;  %v441_v16 = vsel %vm891_vm12, %v764_v33, %v437_v43 }
 0x50e   :  { %vm793_vm8 = vcmp.ge.s32.totalorder %v311_v37, 8  ;;  %vm803_vm9 = vcmp.lt.s32.totalorder %v311_v37, 12  ;;  %v360_v7 = vsub.f32 1.0, %v359_v48  ;;  %v377_v48 = vadd.f32 %v761_v32, %v376_v18 }
 0x50f   :  { %v405_v3 = vsub.f32 1.0, %v404_v31  ;;  %v392_v17 = vadd.f32 %v782_v44, %v391_v45  ;;  %v472_v18 = vand.u32 2147483647, %v754_v29  ;;  %v474_v19 = vand.u32 2147483648, %v754_v29 }
 0x510   :  { %v361_v30 = vmul.f32 %v770_v36, %v360_v7  ;;  %v381_v24 = vsel %vm878_vm15, %v761_v32, %v377_v48  ;;  %vm1099_vm12 = vweird.f32 %v746_v26  ;;  %v467_v21 = vadd.f32 %v789_v47, %v466_v59 }
 0x511   :  { %vm926_vm10 = vmor %vm1099_vm12, %vm1098_vm5  ;;  %vm469_vm13 = vweird.f32 %v789_v47  ;;  %vm1103_vm15 = vweird.f32 %v749_v27  ;;  %vm468_vm5 = vweird.f32 %v754_v29  ;;  %v430_v31 = vor.u32 1.1754944e-38, %v429_v0 }
 0x512   :  { %v362_v63 = vadd.f32 %v770_v36, %v361_v30  ;;  %v426_v30 = vsel %vm915_vm11, %v768_v35, %v422_v60  ;;  %vm939_vm6 = vmor %vm1103_vm15, %vm1102_vm3  ;;  %v406_v38 = vmul.f32 %v817_v9, %v405_v3  ;;  %v446_v35 = vsel %vm830_vm14, %v445_v41, %v441_v16 }
 0x513   :  { %v456_v27 = vsel %vm939_vm6, %v775_v39, %v452_v20  ;;  %vm1106_vm11 = vweird.f32 %v782_v44  ;;  %vm1107_vm12 = vweird.f32 %v752_v28  ;;  %v386_v29 = vsel %vm842_vm2, %v819_v10, %v381_v24  ;;  %vm964_vm14 = vmor %vm468_vm5, %vm469_vm13 }
 0x514   :  { %v366_v26 = vsel %vm926_vm10, %v770_v36, %v362_v63  ;;  %vm957_vm3 = vmor %vm1107_vm12, %vm1106_vm11  ;;  %v370_v36 = vor.u32 1.1754944e-38, %v369_v46  ;;  %vm428_vm10 = vcmp.eq.f32.partialorder %v427_v22, 8.507059e+37  ;;  %vm368_vm15 = vcmp.eq.f32.partialorder %v367_v40, 8.507059e+37 }
 0x515   :  { %vm968_vm6 = vcmp.eq.f32.partialorder %v472_v18, 8.507059e+37  ;;  %v431_v23 = vsel %vm428_vm10, %v430_v31, %v426_v30  ;;  %v396_v45 = vsel %vm957_vm3, %v782_v44, %v392_v17  ;;  %vm1114_vm11 = vcmp.lt.s32.totalorder %v685_v62, 12  ;;  %vm1118_vm2 = vmand %vm793_vm8, %vm803_vm9 }
 0x516   :  { %vm1115_vm12 = vcmp.ge.s32.totalorder %v685_v62, 8  ;;  %v371_v37 = vsel %vm368_vm15, %v370_v36, %v366_v26  ;;  %v471_v40 = vsel %vm964_vm14, %v789_v47, %v467_v21  ;;  %v475_v46 = vor.u32 1.1754944e-38, %v474_v19  ;;  %vm1121_vm10 = vmmov %vm1118_vm2 }
 0x517   :  { %vm979_vm4 = vmand %vm1115_vm12, %vm1114_vm11  ;;  %v491_v44 = vsel %vm1118_vm2, %v446_v35, %v710_v61  ;;  %v461_v62 = vsel %vm867_vm1, %v834_v25, %v456_v27  ;;  %v407_v48 = vadd.f32 %v817_v9, %v406_v38  ;;  %vm409_vm13 = vweird.f32 %v817_v9 }
 0x518   :  { %v490_v47 = vsel %vm979_vm4, %v431_v23, %v716_v1  ;;  %vm408_vm5 = vweird.f32 %v766_v34  ;;  %v412_v42 = vand.u32 2147483647, %v766_v34  ;;  %v414_v61 = vand.u32 2147483648, %v766_v34  ;;  %vm324_vm1 = vmand %vm859_vm7, %vm863_vm0 }
 0x519   :  { %v486_v25 = vsel %vm979_vm4, %v371_v37, %v718_v2  ;;  %v476_v1 = vsel %vm968_vm6, %v475_v46, %v471_v40  ;;  %v492_v34 = vsel %vm324_vm1, %v461_v62, %v721_v4  ;;  %vm398_vm3 = vcmp.eq.f32.partialorder %v397_v12, 8.507059e+37  ;;  %vm1024_vm4 = vmor %vm408_vm5, %vm409_vm13 }
 0x51a   :  { %v487_v4 = vsel %vm1121_vm10, %v386_v29, %v705_v58  ;;  %vm1122_vm15 = vnez %v1095_v14  ;;  %vm1123_vm14 = vnez %v1093_v11  ;;  %v411_v12 = vsel %vm1024_vm4, %v817_v9, %v407_v48 }
 0x51b   :  { %vm325_vm6 = vmand %vm1123_vm14, %vm1122_vm15  ;;  %v415_v49 = vor.u32 1.1754944e-38, %v414_v61  ;;  %vm413_vm8 = vcmp.eq.f32.partialorder %v412_v42, 8.507059e+37 }
 0x51c   :  { %v493_v58 = vsel %vm325_vm6, %v476_v1, %v729_v8 }
 0x51d   :  { %v416_v16 = vsel %vm413_vm8, %v415_v49, %v411_v12 }
 0x51e   :  { %v489_v8 = vsel %vm325_vm6, %v416_v16, %v737_v15 }
 0x554   :  { %v798_v51 = vpop.permute.xlu2 %509 }
 0x55c   :  { %v514_v50 = vpop.permute.xlu2 %513 }
 0x55d   :  { %v517_v63 = vmul.f32 %v514_v50, %v491_v44  ;;  %v400_v50 = vor.u32 1.1754944e-38, %v399_v13  ;;  %v516_v13 = vmul.f32 %v798_v51, %v487_v4 }
 0x55f   :  { %v401_v20 = vsel %vm398_vm3, %v400_v50, %v396_v45 }
 0x560   :  { %v488_v51 = vsel %vm324_vm1, %v401_v20, %v724_v6 }
 0x565   :  { %v526_v59 = vpop.permute.xlu2 %525 }
 0x566   :  { %v529_v5 = vmul.f32 %v526_v59, %v492_v34 }
 0x56c   :  { %v882_v52 = vpop.permute.xlu1 %521 }
 0x56d   :  { %v500_v7 = vpop.permute.xlu0 %499  ;;  %v528_v17 = vmul.f32 %v882_v52, %v488_v51 }
 0x56e   :  { %v506_v0 = vmul.f32 %v500_v7, %v486_v25 }
 0x570   :  { %v518_v22 = vadd.f32 %v516_v13, %v506_v0 }
 0x572   :  { %v530_v53 = vadd.f32 %v528_v17, %v518_v22 }
 0x575   :  { %v504_v60 = vpop.permute.xlu1 %503 }
 0x576   :  { %v507_v56 = vmul.f32 %v504_v60, %v490_v47  ;;  %v538_v3 = vpop.permute.xlu0 %537 }
 0x577   :  { %v541_v54 = vmul.f32 %v538_v3, %v493_v58 }
 0x578   :  { %v519_v28 = vadd.f32 %v517_v63, %v507_v56 }
 0x57a   :  { %v531_v7 = vadd.f32 %v529_v5, %v519_v28 }
 0x57c   :  { %v543_v9 = vadd.f32 %v541_v54, %v531_v7 }
 0x57e   :  { %545 = vst [vmem:[%s1071_s4 + $0x8] sm:$0xff] %v543_v9  ;;  %v534_v18 = vpop.permute.xlu1 %533 }
 0x57f   :  { %v540_v19 = vmul.f32 %v534_v18, %v489_v8 }
 0x581   :  { %v542_v55 = vadd.f32 %v540_v19, %v530_v53 }
 0x583   :  { %544 = vst [vmem:[%s1071_s4] sm:$0xff] %v542_v55 }

</bundles_post_ra>
